<compile_context>
chip_gen: v5e
topology: v5e:2x2
jax: 0.10.0
libtpu: 0.0.40
codegen_flags: <defaults>
</compile_context>

<pallas_src>
import functools

import jax
import jax.numpy as jnp
from jax.experimental import pallas as pl
from jax.experimental.pallas import tpu as pltpu

LANE = 128


def _round_up(n, m):
    return ((n + m - 1) // m) * m


def _choose_row_tile(M, tm_max):
    # Rows multiple of 8, never above tm_max, and small enough that the grid
    # has >=2 steps when M allows it (so v7x's two TensorCores both get work).
    half = _round_up(max(1, -(-M // 2)), 8)
    return max(8, min(tm_max, half))


def _grace_kernel(x_ref, wf_ref, bf_ref, wp2_ref, bp2_ref, z_ref):
    # Cast x in-kernel (no wrapper-side astype pass over HBM).
    x = x_ref[...].astype(wf_ref.dtype)
    # Fused (conv1 -> conv2 -> proj_head[0]) as one matmul; bias+ReLU in f32.
    h = jnp.dot(x, wf_ref[...], preferred_element_type=jnp.float32) + bf_ref[...]
    h = jnp.maximum(h, 0.0)
    # proj_head[2]
    z = (jnp.dot(h.astype(wp2_ref.dtype), wp2_ref[...],
                 preferred_element_type=jnp.float32) + bp2_ref[...])
    z_ref[...] = z.astype(z_ref.dtype)


def fuse_grace_params(params, compute_dtype=jnp.bfloat16):
    """Pre-compose the three activation-free linears (exactly, in f32).

    Only the hidden (VMEM-resident) dim is padded to 128 lanes; the contraction
    dim E and the output dim proj_dim are NOT padded (kernel is HBM-bound, so
    extra bytes would only hurt).
    """
    (w1, b1), (w2, b2), (wp1, bp1), (wp2, bp2) = params
    P1 = wp1.shape[1]
    P1p = _round_up(max(P1, LANE), LANE)

    w_fused = w1 @ w2 @ wp1                               # (E, P1)
    b_fused = b1 @ w2 @ wp1 + b2 @ wp1 + bp1              # (1, P1)

    w_fused = jnp.pad(w_fused, ((0, 0), (0, P1p - P1))).astype(compute_dtype)
    b_fused = jnp.pad(b_fused, ((0, 0), (0, P1p - P1))).astype(jnp.float32)
    wp2_p = jnp.pad(wp2, ((0, P1p - P1), (0, 0))).astype(compute_dtype)
    bp2_p = bp2.astype(jnp.float32)
    return w_fused, b_fused, wp2_p, bp2_p


def _encode_project(x, fused, *, tm):
    """Run encode()+project() on one embedding table. x: (M, E)."""
    w_fused, b_fused, wp2_p, bp2_p = fused
    M, E = x.shape
    P1p = w_fused.shape[1]
    P2 = wp2_p.shape[1]

    tm_eff = _choose_row_tile(M, tm)
    grid = (pl.cdiv(M, tm_eff),)

    # Resident weights: constant index_map, tiny footprint.
    # TODO(synk): pipeline_mode=pl.Buffered(1) would skip double-buffering these
    # (~100 KB VMEM saved); kept on the default path for lowering portability.
    full2d = lambda a: pl.BlockSpec(a.shape, lambda i: (0, 0))

    itemsize = jnp.dtype(x.dtype).itemsize
    cost = pl.CostEstimate(
        flops=2 * M * (E * P1p + P1p * P2),
        transcendentals=0,
        bytes_accessed=(M * (E * itemsize + P2 * 4)
                        + w_fused.size * jnp.dtype(w_fused.dtype).itemsize
                        + wp2_p.size * jnp.dtype(wp2_p.dtype).itemsize
                        + (b_fused.size + bp2_p.size) * 4),
    )

    return pl.pallas_call(
        _grace_kernel,
        out_shape=jax.ShapeDtypeStruct((M, P2), jnp.float32),
        grid_spec=pltpu.PrefetchScalarGridSpec(
            num_scalar_prefetch=0,
            grid=grid,
            in_specs=[
                pl.BlockSpec((tm_eff, E), lambda i: (i, 0)),   # x, row-tiled
                full2d(w_fused), full2d(b_fused),
                full2d(wp2_p), full2d(bp2_p),
            ],
            # Output last dim == full array dim (64): legal BlockSpec, no
            # column zero-padding, no post-call slice copy.
            out_specs=pl.BlockSpec((tm_eff, P2), lambda i: (i, 0)),
        ),
        compiler_params=pltpu.CompilerParams(
            dimension_semantics=("parallel",)),
        cost_estimate=cost,
    )(x, w_fused, b_fused, wp2_p, bp2_p)


@functools.partial(jax.jit, static_argnames=("tm", "compute_dtype"))
def grace_forward(edge_index1, edge_index2, user_emb, item_emb, params,
                  *, tm=1024, compute_dtype=jnp.bfloat16):
    # edge_index1 / edge_index2 are unused by the reference forward (encode()
    # never touches them); kept for signature parity.
    del edge_index1, edge_index2
    fused = fuse_grace_params(params, compute_dtype)
    # Two calls share the same resident weights -> no HBM concat of the inputs.
    z_user = _encode_project(user_emb, fused, tm=tm)
    z_item = _encode_project(item_emb, fused, tm=tm)
    # TODO(synk): if the consumer can accept (z_user, z_item) separately, drop
    # this final concat to save one more HBM pass over z.
    z = jnp.concatenate([z_user, z_item], axis=0)
    # z1 and z2 are mathematically identical (same inputs, same params,
    # edge_index ignored) -> compute once, return twice.
    return z, z


def _xavier_uniform(key, shape):
    fan_in, fan_out = shape[0], shape[1]
    a = jnp.sqrt(6.0 / (fan_in + fan_out))
    return jax.random.uniform(key, shape, jnp.float32, -a, a)


def _linear_params(key, fan_in, fan_out):
    # Matches the scale of PyTorch nn.Linear defaults.
    kw, kb = jax.random.split(key)
    bound = jnp.sqrt(1.0 / fan_in)
    w = jax.random.uniform(kw, (fan_in, fan_out), jnp.float32, -bound, bound)
    b = jax.random.uniform(kb, (1, fan_out), jnp.float32, -bound, bound)
    return w, b


if __name__ == "__main__":
    num_users, num_items = 8, 8
    emb_size, num_layers, proj_dim = 64, 2, 64

    key = jax.random.PRNGKey(0)
    k_u, k_i, k_c1, k_c2, k_p1, k_p2, k_e = jax.random.split(key, 7)

    user_emb = _xavier_uniform(k_u, (num_users, emb_size))
    item_emb = _xavier_uniform(k_i, (num_items, emb_size))

    params = (
        _linear_params(k_c1, emb_size, emb_size),   # convs[0]
        _linear_params(k_c2, emb_size, emb_size),   # convs[1]
        _linear_params(k_p1, emb_size, proj_dim),   # proj_head[0]
        _linear_params(k_p2, proj_dim, proj_dim),   # proj_head[2]
    )

    # Dummy edge indices (unused by the forward, shape (2, num_edges)).
    edge_index1 = jax.random.randint(k_e, (2, 32), 0, num_users + num_items)
    edge_index2 = edge_index1[:, ::-1]

    # Default (bf16 compute) path and exact f32 path.
    z1, z2 = grace_forward(edge_index1, edge_index2, user_emb, item_emb, params)
    z1f, z2f = grace_forward(edge_index1, edge_index2, user_emb, item_emb,
                             params, compute_dtype=jnp.float32)
    jax.block_until_ready((z1, z2, z1f, z2f))

    # Reference check in plain JAX (layer-by-layer, unfused).
    def ref_once(x, params):
        (w1, b1), (w2, b2), (wp1, bp1), (wp2, bp2) = params
        h = x @ w1 + b1
        h = h @ w2 + b2
        p = jnp.maximum(h @ wp1 + bp1, 0.0)
        return p @ wp2 + bp2

    x_full = jnp.concatenate([user_emb, item_emb], axis=0)
    ref = ref_once(x_full, params)

    N = num_users + num_items
    assert z1.shape == (N, proj_dim) and z2.shape == (N, proj_dim)
    assert jnp.array_equal(z1, z2) and jnp.array_equal(z1f, z2f)
    # Exact path: tight tolerance (fused weight composition is f32-exact).
    assert jnp.allclose(z1f, ref, atol=1e-4, rtol=1e-4)
    # bf16 compute path: looser tolerance (expected cast drift).
    assert jnp.allclose(z1, ref, atol=2e-2, rtol=5e-2)

    print("KERNEL_OK")
</pallas_src>

<mosaic_0001>
module attributes {stable_mosaic.version = 11 : i64} {
  func.func @_grace_kernel(%arg0: i32, %arg1: memref<8x64xf32, #tpu.memory_space<vmem>>, %arg2: memref<64x128xbf16, #tpu.memory_space<vmem>>, %arg3: memref<1x128xf32, #tpu.memory_space<vmem>>, %arg4: memref<128x64xbf16, #tpu.memory_space<vmem>>, %arg5: memref<1x64xf32, #tpu.memory_space<vmem>>, %arg6: memref<8x64xf32, #tpu.memory_space<vmem>>) attributes {dimension_semantics = [#tpu.dimension_semantics<parallel>], iteration_bounds = array<i64: 1>, scalar_prefetch = 0 : i64, scratch_operands = 0 : i64, tpu.core_type = #tpu.core_type<tc>, window_params = [{transform_indices = @transform_0, window_bounds = array<i64: 8, 64>}, {pipeline_mode = #tpu.pipeline_mode<synchronous>, transform_indices = @transform_1, window_bounds = array<i64: 64, 128>}, {pipeline_mode = #tpu.pipeline_mode<synchronous>, transform_indices = @transform_2, window_bounds = array<i64: 1, 128>}, {pipeline_mode = #tpu.pipeline_mode<synchronous>, transform_indices = @transform_3, window_bounds = array<i64: 128, 64>}, {pipeline_mode = #tpu.pipeline_mode<synchronous>, transform_indices = @transform_4, window_bounds = array<i64: 1, 64>}, {transform_indices = @transform_5, window_bounds = array<i64: 8, 64>}]} {
    %c0 = arith.constant 0 : index
    %c0_0 = arith.constant 0 : index
    %0 = vector.load %arg1[%c0, %c0_0] : memref<8x64xf32, #tpu.memory_space<vmem>>, vector<8x64xf32>
    %1 = arith.truncf %0 : vector<8x64xf32> to vector<8x64xbf16>
    %c0_1 = arith.constant 0 : index
    %c0_2 = arith.constant 0 : index
    %2 = vector.load %arg2[%c0_1, %c0_2] : memref<64x128xbf16, #tpu.memory_space<vmem>>, vector<64x128xbf16>
    %cst = arith.constant dense<0.000000e+00> : vector<8x128xf32>
    %3 = tpu.matmul %1, %2, %cst {dimension_numbers = #tpu.dot_dimension_numbers<[1], [0], [0], [1], [0, 0, 1, 1], [], []>} : vector<8x64xbf16>, vector<64x128xbf16>, vector<8x128xf32> -> vector<8x128xf32>
    %c0_3 = arith.constant 0 : index
    %c0_4 = arith.constant 0 : index
    %4 = vector.load %arg3[%c0_3, %c0_4] : memref<1x128xf32, #tpu.memory_space<vmem>>, vector<1x128xf32>
    %5 = vector.broadcast %4 : vector<1x128xf32> to vector<8x128xf32>
    %6 = arith.addf %3, %5 : vector<8x128xf32>
    %cst_5 = arith.constant 0.000000e+00 : f32
    %7 = vector.broadcast %cst_5 : f32 to vector<8x128xf32>
    %8 = arith.maximumf %6, %7 : vector<8x128xf32>
    %9 = arith.truncf %8 : vector<8x128xf32> to vector<8x128xbf16>
    %c0_6 = arith.constant 0 : index
    %c0_7 = arith.constant 0 : index
    %10 = vector.load %arg4[%c0_6, %c0_7] : memref<128x64xbf16, #tpu.memory_space<vmem>>, vector<128x64xbf16>
    %cst_8 = arith.constant dense<0.000000e+00> : vector<8x64xf32>
    %11 = tpu.matmul %9, %10, %cst_8 {dimension_numbers = #tpu.dot_dimension_numbers<[1], [0], [0], [1], [0, 0, 1, 1], [], []>} : vector<8x128xbf16>, vector<128x64xbf16>, vector<8x64xf32> -> vector<8x64xf32>
    %c0_9 = arith.constant 0 : index
    %c0_10 = arith.constant 0 : index
    %12 = vector.load %arg5[%c0_9, %c0_10] : memref<1x64xf32, #tpu.memory_space<vmem>>, vector<1x64xf32>
    %13 = vector.broadcast %12 : vector<1x64xf32> to vector<8x64xf32>
    %14 = arith.addf %11, %13 : vector<8x64xf32>
    %c0_11 = arith.constant 0 : index
    %c0_12 = arith.constant 0 : index
    %15 = vector.load %arg6[%c0_11, %c0_12] : memref<8x64xf32, #tpu.memory_space<vmem>>, vector<8x64xf32>
    tpu.vector_store %arg6[%c0_11, %c0_12], %14 {strides = array<i32>} : memref<8x64xf32, #tpu.memory_space<vmem>>, vector<8x64xf32>,
    return
  }
  func.func @transform_0(%arg0: i32) -> (i32, i32) {
    %c0_i32 = arith.constant 0 : i32
    %c0_i32_0 = arith.constant 0 : i32
    return %arg0, %c0_i32 : i32, i32
  }
  func.func @transform_1(%arg0: i32) -> (i32, i32) {
    %c0_i32 = arith.constant 0 : i32
    %c0_i32_0 = arith.constant 0 : i32
    %c0_i32_1 = arith.constant 0 : i32
    return %c0_i32, %c0_i32_0 : i32, i32
  }
  func.func @transform_2(%arg0: i32) -> (i32, i32) {
    %c0_i32 = arith.constant 0 : i32
    %c0_i32_0 = arith.constant 0 : i32
    %c0_i32_1 = arith.constant 0 : i32
    return %c0_i32, %c0_i32_0 : i32, i32
  }
  func.func @transform_3(%arg0: i32) -> (i32, i32) {
    %c0_i32 = arith.constant 0 : i32
    %c0_i32_0 = arith.constant 0 : i32
    %c0_i32_1 = arith.constant 0 : i32
    return %c0_i32, %c0_i32_0 : i32, i32
  }
  func.func @transform_4(%arg0: i32) -> (i32, i32) {
    %c0_i32 = arith.constant 0 : i32
    %c0_i32_0 = arith.constant 0 : i32
    %c0_i32_1 = arith.constant 0 : i32
    return %c0_i32, %c0_i32_0 : i32, i32
  }
  func.func @transform_5(%arg0: i32) -> (i32, i32) {
    %c0_i32 = arith.constant 0 : i32
    %c0_i32_0 = arith.constant 0 : i32
    return %arg0, %c0_i32 : i32, i32
  }
}

</mosaic_0001>

<bundles_post_ra>
// kernel: grace_forward.3
= control target key start
LH: loop header
LB: loop body
LE: loop exit
PB: predicated region body
PF: predicated region fallthrough
CT: control target
= control target key end

     0   :  { %vm59_vm0 = vcmask 523264   ;;  %s307_s1 = inlined_call_operand.vmem [shape: bf16[64,128], index: 1, kind: input, shape index: {}]   ;;  %s308_s3 = inlined_call_operand.vmem [shape: bf16[128,64], index: 3, kind: input, shape index: {}]   ;;  %s309_s2 = inlined_call_operand.vmem [shape: f32[1,128], index: 2, kind: input, shape index: {}]   ;;  %s310_s0 = inlined_call_operand.vmem [shape: f32[8,64], index: 0, kind: input, shape index: {}]   ;;  %s311_s4 = inlined_call_operand.vmem [shape: f32[1,64], index: 4, kind: input, shape index: {}]   ;;  %s312_s5 = inlined_call_operand.vmem [shape: f32[8,64], index: 5, kind: output, shape index: {}]  }
   0x1   :  { %v216_v0 = vld [vmem:[%s307_s1 + $0x18] sm:$0xff]  ;;  %v215_v2 = vld [vmem:[%s307_s1 + $0x10] sm:$0xff]  ;;  %v214_v4 = vld [vmem:[%s307_s1 + $0x8] sm:$0xff] }
   0x2   :  { %v224_v1 = vld [vmem:[%s308_s3 + $0x38] sm:$0xff]  ;;  %67 = vmatpush.bf16.msra.mxu0 %v216_v0  ;;  %v223_v3 = vld [vmem:[%s308_s3 + $0x30] sm:$0xff]  ;;  %v222_v5 = vld [vmem:[%s308_s3 + $0x28] sm:$0xff] }
   0x3   :  { %146 = vmatpush.bf16.msra.mxu1 %v224_v1  ;;  %v213_v6 = vld [vmem:[%s307_s1] sm:$0xff]  ;;  %v220_v10 = vld [vmem:[%s308_s3 + $0x18] sm:$0xff]  ;;  %v219_v11 = vld [vmem:[%s308_s3 + $0x10] sm:$0xff] }
   0x4   :  { %v21_v7 = vld [vmem:[%s310_s0] sm:$0xff]  ;;  %v218_v12 = vld [vmem:[%s308_s3 + $0x8] sm:$0xff] }
   0x5   :  { %v221_v8 = vld [vmem:[%s308_s3 + $0x20] sm:$0xff]  ;;  %v22_v9 = vpack.c.bf16 %v21_v7, %v21_v7 }
   0x6   :  { %68 = vmatpush.bf16.msra.mxu0 %v215_v2  ;;  %v217_v13 = vld [vmem:[%s308_s3] sm:$0xff] }
   0x7   :  { %147 = vmatpush.bf16.msra.mxu1 %v223_v3  ;;  %v225_v14 = vld [vmem:[%s309_s2] ss:$0 sm:$0xff] }
   0x8   :  { %v226_v20 = vld [vmem:[%s311_s4] ss:$0 sm:$0xff] }
   0xa   :  { %69 = vmatpush.bf16.msra.mxu0 %v214_v4 }
   0xb   :  { %148 = vmatpush.bf16.msra.mxu1 %v222_v5 }
   0xe   :  { %70 = vmatpush.bf16.msra.mxu0 %v213_v6 }
   0xf   :  { %149 = vmatpush.bf16.msra.mxu1 %v221_v8 }
  0x11   :  { %180 = vmatmul.msk.bf16.vlgmr.msra.gmra.mxu0 %vm59_vm0, %v22_v9 }
  0x13   :  { %150 = vmatpush.bf16.msra.mxu1 %v220_v10 }
  0x17   :  { %151 = vmatpush.bf16.msra.mxu1 %v219_v11 }
  0x1b   :  { %152 = vmatpush.bf16.msra.mxu1 %v218_v12 }
  0x1f   :  { %153 = vmatpush.bf16.msra.mxu1 %v217_v13 }
  0x8e   :  { %v72_v15 = vpop.f32.mrf.mxu0 }
  0x8f   :  { %v73_v16 = vadd.f32 %v225_v14, %v72_v15 }
  0x91   :  { %v76_v17 = vmax.f32 %v73_v16, 0.0 }
  0x93   :  { %v77_v18 = vpack.c.bf16 %v76_v17, %v76_v17 }
  0x95   :  { %154 = vmatmul.bf16.vlgmr.msra.gmra.mxu1 %v77_v18 }
  0x96   :  { %v74_v19 = vpop.f32.mrf.mxu0 }
 0x112   :  { %v155_v21 = vpop.f32.mrf.mxu1 }
 0x113   :  { %v156_v22 = vadd.f32 %v226_v20, %v155_v21 }
 0x115   :  { %159 = vst.msk [vmem:[%s312_s5] sm:$0xff] %vm59_vm0, %v156_v22 }
 0x11a   :  { %v157_v23 = vpop.f32.mrf.mxu1 }

</bundles_post_ra>
